<compile_context>
chip_gen: v7x
topology: tpu7x:2x2x1
jax: 0.10.0
libtpu: 0.0.40
codegen_flags: <defaults>
</compile_context>

<pallas_src>
import functools

import jax
import jax.numpy as jnp
from jax.experimental import pallas as pl
from jax.experimental.pallas import tpu as pltpu

LANE = 128      # TPU lane width: last dim of the flattened slab.
SUBLANE = 8     # f32 sublane count: shape of the VMEM accumulator.


def _round_up(x, m):
    return (x + m - 1) // m * m


def _abs_loss_kernel(p_ref, t_ref, o_ref, acc_ref, *,
                     total_elems, valid_rows, block_rows):
    """Accumulate sum(|p - t|) into an (8,128) VMEM acc; finalize mean at last step."""
    i = pl.program_id(0)

    @pl.when(i == 0)
    def _():
        acc_ref[...] = jnp.zeros_like(acc_ref)

    diff = jnp.abs(p_ref[...].astype(jnp.float32) - t_ref[...].astype(jnp.float32))

    # Only the last grid step can be a partial block; its out-of-range rows
    # contain unspecified data and must be masked out (static check: skip the
    # mask entirely when every block is full).
    if valid_rows % block_rows != 0:
        row = jax.lax.broadcasted_iota(jnp.int32, diff.shape, 0) + i * block_rows
        diff = jnp.where(row < valid_rows, diff, 0.0)

    # Reduce the (block_rows, 128) tile to one vreg-shaped (8, 128) partial:
    # VPU adds across vregs only -- no per-step cross-lane reduce, no scalar
    # SMEM read-modify-write chain.
    acc_ref[...] += jnp.sum(diff.reshape(-1, SUBLANE, LANE), axis=0)

    @pl.when(i == pl.num_programs(0) - 1)
    def _():
        o_ref[0, 0] = jnp.sum(acc_ref[...]) / jnp.float32(total_elems)


def abs_loss(predictions, target, *, block_rows=2048):
    """Pallas equivalent of: torch.mean(torch.abs(predictions - target))."""
    assert predictions.shape == target.shape, "shapes must match (no broadcasting)"
    total = predictions.size

    # Flatten in the native dtype (free for contiguous arrays, no HBM copy).
    p = predictions.reshape(-1)
    t = target.reshape(-1)

    # Pad (a copy) only when the flat size is not a multiple of the lane width;
    # the pad is < 128 elements and zero in BOTH arrays -> contributes |0-0|=0.
    pad = (-total) % LANE
    if pad:
        p = jnp.pad(p, (0, pad))
        t = jnp.pad(t, (0, pad))

    rows = (total + pad) // LANE
    p2 = p.reshape(rows, LANE)
    t2 = t.reshape(rows, LANE)

    # Keep the row-block a multiple of the dtype's native sublane tiling so the
    # block shape is always legal and reshapes cleanly to (-1, 8, 128) in the
    # kernel.  The last (possibly only) block may extend past `rows`; the
    # kernel masks those rows.
    itemsize = jnp.dtype(predictions.dtype).itemsize
    row_mult = SUBLANE * max(1, 4 // itemsize)          # 8 (f32), 16 (bf16), 32 (int8)
    block_rows_eff = min(_round_up(block_rows, row_mult), _round_up(rows, row_mult))
    steps = pl.cdiv(rows, block_rows_eff)

    out = pl.pallas_call(
        functools.partial(
            _abs_loss_kernel,
            total_elems=float(total),
            valid_rows=rows,
            block_rows=block_rows_eff,
        ),
        out_shape=jax.ShapeDtypeStruct((1, 1), jnp.float32),
        grid_spec=pltpu.PrefetchScalarGridSpec(
            num_scalar_prefetch=0,
            grid=(steps,),
            in_specs=[
                pl.BlockSpec((block_rows_eff, LANE), lambda i: (i, 0)),
                pl.BlockSpec((block_rows_eff, LANE), lambda i: (i, 0)),
            ],
            out_specs=pl.BlockSpec(memory_space=pltpu.SMEM),
            scratch_shapes=[pltpu.VMEM((SUBLANE, LANE), jnp.float32)],
        ),
        compiler_params=pltpu.CompilerParams(
            dimension_semantics=("arbitrary",),   # sequential reduction axis
        ),
    )(p2, t2)
    return out[0, 0]


if __name__ == "__main__":
    key = jax.random.PRNGKey(0)
    kp, kt = jax.random.split(key)

    # Small NCHW-shaped example inputs (the module is shape-agnostic).
    shape = (2, 4, 16, 16)
    predictions = jax.random.normal(kp, shape, dtype=jnp.float32)
    target = jax.random.normal(kt, shape, dtype=jnp.float32)

    loss = jax.block_until_ready(abs_loss(predictions, target))
    ref = jnp.mean(jnp.abs(predictions - target))
    assert jnp.allclose(loss, ref, rtol=1e-5, atol=1e-6), (loss, ref)

    # Ragged size (not a multiple of 128) exercises the masked-tail path.
    shape2 = (3, 5, 7, 11)
    p_r = jax.random.normal(kp, shape2, dtype=jnp.float32)
    t_r = jax.random.normal(kt, shape2, dtype=jnp.float32)
    loss2 = jax.block_until_ready(abs_loss(p_r, t_r))
    ref2 = jnp.mean(jnp.abs(p_r - t_r))
    assert jnp.allclose(loss2, ref2, rtol=1e-5, atol=1e-6), (loss2, ref2)

    # Multi-grid-step case exercises the cross-step accumulator.
    shape3 = (2, 4, 64, 64)   # 32768 elems -> 256 rows -> 2 steps at block_rows=128
    p_m = jax.random.normal(kp, shape3, dtype=jnp.float32)
    t_m = jax.random.normal(kt, shape3, dtype=jnp.float32)
    loss3 = jax.block_until_ready(abs_loss(p_m, t_m, block_rows=128))
    ref3 = jnp.mean(jnp.abs(p_m - t_m))
    assert jnp.allclose(loss3, ref3, rtol=1e-5, atol=1e-6), (loss3, ref3)

    print("KERNEL_OK")
</pallas_src>

<mosaic_0001>
module attributes {stable_mosaic.version = 11 : i64} {
  func.func @_abs_loss_kernel(%arg0: i32, %arg1: memref<16x128xf32, #tpu.memory_space<vmem>>, %arg2: memref<16x128xf32, #tpu.memory_space<vmem>>, %arg3: memref<1x1xf32, #tpu.memory_space<smem>>, %arg4: memref<8x128xf32, #tpu.memory_space<vmem>>) attributes {dimension_semantics = [#tpu.dimension_semantics<arbitrary>], iteration_bounds = array<i64: 1>, scalar_prefetch = 0 : i64, scratch_operands = 1 : i64, tpu.core_type = #tpu.core_type<tc>, window_params = [{transform_indices = @transform_0, window_bounds = array<i64: 16, 128>}, {transform_indices = @transform_1, window_bounds = array<i64: 16, 128>}, {transform_indices = @transform_2, window_bounds = array<i64: 1, 1>}]} {
    %c0_i32 = arith.constant 0 : i32
    %0 = arith.cmpi eq, %arg0, %c0_i32 : i32
    %1 = arith.extui %0 : i1 to i32
    %c0_i32_0 = arith.constant 0 : i32
    %2 = arith.cmpi ne, %1, %c0_i32_0 : i32
    scf.if %2 {
      %cst_10 = arith.constant 0.000000e+00 : f32
      %15 = vector.broadcast %cst_10 : f32 to vector<8x128xf32>
      %c0_11 = arith.constant 0 : index
      %c0_12 = arith.constant 0 : index
      %16 = vector.load %arg4[%c0_11, %c0_12] : memref<8x128xf32, #tpu.memory_space<vmem>>, vector<8x128xf32>
      tpu.vector_store %arg4[%c0_11, %c0_12], %15 {strides = array<i32>} : memref<8x128xf32, #tpu.memory_space<vmem>>, vector<8x128xf32>,
    } else {
    }
    %c0 = arith.constant 0 : index
    %c0_1 = arith.constant 0 : index
    %3 = vector.load %arg1[%c0, %c0_1] : memref<16x128xf32, #tpu.memory_space<vmem>>, vector<16x128xf32>
    %c0_2 = arith.constant 0 : index
    %c0_3 = arith.constant 0 : index
    %4 = vector.load %arg2[%c0_2, %c0_3] : memref<16x128xf32, #tpu.memory_space<vmem>>, vector<16x128xf32>
    %5 = arith.subf %3, %4 : vector<16x128xf32>
    %6 = math.absf %5 : vector<16x128xf32>
    %c0_4 = arith.constant 0 : index
    %c0_5 = arith.constant 0 : index
    %7 = vector.load %arg4[%c0_4, %c0_5] : memref<8x128xf32, #tpu.memory_space<vmem>>, vector<8x128xf32>
    %8 = vector.shape_cast %6 : vector<16x128xf32> to vector<2x8x128xf32>
    %cst = arith.constant dense<0.000000e+00> : vector<8x128xf32>
    %9 = vector.multi_reduction <add>, %8, %cst [0] : vector<2x8x128xf32> to vector<8x128xf32>
    %10 = arith.addf %7, %9 : vector<8x128xf32>
    %c0_6 = arith.constant 0 : index
    %c0_7 = arith.constant 0 : index
    %11 = vector.load %arg4[%c0_6, %c0_7] : memref<8x128xf32, #tpu.memory_space<vmem>>, vector<8x128xf32>
    tpu.vector_store %arg4[%c0_6, %c0_7], %10 {strides = array<i32>} : memref<8x128xf32, #tpu.memory_space<vmem>>, vector<8x128xf32>,
    %c0_i32_8 = arith.constant 0 : i32
    %12 = arith.cmpi eq, %arg0, %c0_i32_8 : i32
    %13 = arith.extui %12 : i1 to i32
    %c0_i32_9 = arith.constant 0 : i32
    %14 = arith.cmpi ne, %13, %c0_i32_9 : i32
    scf.if %14 {
      %c0_10 = arith.constant 0 : index
      %c0_11 = arith.constant 0 : index
      %15 = vector.load %arg4[%c0_10, %c0_11] : memref<8x128xf32, #tpu.memory_space<vmem>>, vector<8x128xf32>
      %16 = vector.shape_cast %15 : vector<8x128xf32> to vector<1x8x128xf32>
      %cst_12 = arith.constant dense<0.000000e+00> : vector<1xf32>
      %17 = vector.multi_reduction <add>, %16, %cst_12 [1, 2] : vector<1x8x128xf32> to vector<1xf32>
      %18 = vector.shape_cast %17 : vector<1xf32> to vector<1x1x1xf32>
      %19 = vector.extract %18[0, 0, 0] : f32 from vector<1x1x1xf32>
      %cst_13 = arith.constant 2.048000e+03 : f32
      %20 = arith.divf %19, %cst_13 : f32
      %c0_14 = arith.constant 0 : index
      %c0_15 = arith.constant 0 : index
      %21 = memref.load %arg3[%c0_14, %c0_15] : memref<1x1xf32, #tpu.memory_space<smem>>
      memref.store %20, %arg3[%c0_14, %c0_15] : memref<1x1xf32, #tpu.memory_space<smem>>
    } else {
    }
    return
  }
  func.func @transform_0(%arg0: i32) -> (i32, i32) {
    %c0_i32 = arith.constant 0 : i32
    %c0_i32_0 = arith.constant 0 : i32
    return %arg0, %c0_i32 : i32, i32
  }
  func.func @transform_1(%arg0: i32) -> (i32, i32) {
    %c0_i32 = arith.constant 0 : i32
    %c0_i32_0 = arith.constant 0 : i32
    return %arg0, %c0_i32 : i32, i32
  }
  func.func @transform_2(%arg0: i32) -> (i32, i32) {
    %c0_i32 = arith.constant 0 : i32
    %c0_i32_0 = arith.constant 0 : i32
    %c0_i32_1 = arith.constant 0 : i32
    return %c0_i32, %c0_i32_0 : i32, i32
  }
}

</mosaic_0001>

<bundles_post_ra>
// kernel: tpu_custom_call.1
= control target key start
LH: loop header
LB: loop body
LE: loop exit
PB: predicated region body
PF: predicated region fallthrough
CT: control target
= control target key end

     0   :  { %7 = vsyncpa [#allocation4], 0  ;;  %s213_s0 = inlined_call_operand.hbm [shape: f32[16,128], index: 0, kind: input, shape index: {}]   ;;  %s214_s1 = inlined_call_operand.hbm [shape: f32[16,128], index: 1, kind: input, shape index: {}]   ;;  %s215_s2 = inlined_call_operand.hbm [shape: f32[1,1], index: 2, kind: output, shape index: {}]  }
   0x1   :  { %8 = vsyncpa [#allocation7], 0 }
   0x2   :  { %9 = vsyncpa [#allocation5], 0  ;;  %s157_s9 = smov [#allocation3]   ;;  %s97_s13 = scalar_lea.hbm %s213_s0, 256 }
   0x3   :  { %s15_s10 = sshll.u32 %s157_s9, 4  ;;  %p98_p0 = scmp.ne.s32.totalorder %s213_s0, %s97_s13  ;;  %s16_s10 = int_to_ptr.vmem [resolvable:$true] %s15_s10 }
   0x4   :  { %p101_p1 = scmp.lt.u32.totalorder %s97_s13, %s213_s0 }
   0x6   :  { %p103_p2 = pnand %p101_p1, %p98_p0 }
   0x8   :  { %106 = shalt.err (!%p103_p2)
}
   0x9   :  { %s107_s18 = scalar_lea.vmem %s16_s10, 256  ;;  %p112_p4 = scmp.lt.s32.totalorder %s16_s10, %s16_s10 }
   0xa   :  { %p108_p3 = scmp.ne.s32.totalorder %s16_s10, %s107_s18  ;;  %p113_p5 = scmp.lt.s32.totalorder %s107_s18, %s107_s18 }
   0xc   :  { %p114_p6 = por %p113_p5, %p112_p4 }
   0xe   :  { %p115_p7 = pnand %p114_p6, %p108_p3 }
  0x10   :  { %118 = shalt.err (!%p115_p7)
}
  0x11   :  { %s158_s19 = smov 128   ;;  %s159_s20 = smov 8  }
  0x12   :  { %21 = dma.hbm_to_vmem [thread:$0]  %s213_s0, 256, %s16_s10, [#allocation4], %s158_s19, %s158_s19, %s159_s20  }
  0x13   :  { %s160_s23 = smov [#allocation6]   ;;  %s119_s27 = scalar_lea.hbm %s214_s1, 256 }
  0x14   :  { %s27_s24 = sshll.u32 %s160_s23, 4  ;;  %p120_p8 = scmp.ne.s32.totalorder %s214_s1, %s119_s27  ;;  %s28_s24 = int_to_ptr.vmem [resolvable:$true] %s27_s24 }
  0x15   :  { %p123_p9 = scmp.lt.u32.totalorder %s119_s27, %s214_s1 }
  0x17   :  { %p125_p10 = pnand %p123_p9, %p120_p8 }
  0x19   :  { %128 = shalt.err (!%p125_p10)
}
  0x1a   :  { %s129_s4 = scalar_lea.vmem %s28_s24, 256  ;;  %p134_p12 = scmp.lt.s32.totalorder %s28_s24, %s28_s24 }
  0x1b   :  { %p130_p11 = scmp.ne.s32.totalorder %s28_s24, %s129_s4  ;;  %p135_p13 = scmp.lt.s32.totalorder %s129_s4, %s129_s4 }
  0x1d   :  { %p136_p0 = por %p135_p13, %p134_p12 }
  0x1f   :  { %p137_p1 = pnand %p136_p0, %p130_p11 }
  0x21   :  { %140 = shalt.err (!%p137_p1)
}
  0x22   :  { %33 = dma.hbm_to_vmem [thread:$0]  %s214_s1, 256, %s28_s24, [#allocation7], %s158_s19, %s158_s19, %s159_s20  }
  0x23   :  { %151 = dma.done.wait [#allocation4], 256  }
  0x24   :  { %152 = vsyncadd [#allocation4], 4294967040 }
  0x25   :  { %153 = dma.done.wait [#allocation7], 256  }
  0x26   :  { %154 = vsyncadd [#allocation7], 4294967040  ;;  %v45_v0 = vld [vmem:[#allocation3] sm:$0xff]  ;;  %v46_v1 = vld [vmem:[#allocation3 + $0x8] sm:$0xff]  ;;  %s141_s9 = scalar_lea.hbm %s215_s2, 16 }
  0x27   :  { %v47_v2 = vld [vmem:[#allocation6] sm:$0xff]  ;;  %v48_v3 = vld [vmem:[#allocation6 + $0x8] sm:$0xff]  ;;  %p142_p2 = scmp.ne.s32.totalorder %s215_s2, %s141_s9  ;;  %p145_p3 = scmp.lt.u32.totalorder %s141_s9, %s215_s2 }
  0x28   :  { %v49_v4 = vsub.f32 %v45_v0, %v47_v2  ;;  %v50_v5 = vsub.f32 %v46_v1, %v48_v3 }
  0x29   :  { %p147_p4 = pnand %p145_p3, %p142_p2 }
  0x2a   :  { %v51_v6 = vand.u32 2147483647, %v49_v4  ;;  %v52_v7 = vand.u32 2147483647, %v50_v5 }
  0x2c   :  { %v54_v8 = vadd.f32 %v52_v7, %v51_v6 }
  0x2e   :  { %61 = vadd.xlane.f32.xlu0 %v54_v8 }
  0xbb   :  { %v62_v9 = vpop.xlane.xlu0 %61 }
  0xbc   :  { %v63_v10 = vrot.slane %v62_v9, 4 }
  0xbe   :  { %v64_v11 = vadd.f32 %v63_v10, %v62_v9 }
  0xc0   :  { %v65_v12 = vrot.slane %v64_v11, 2 }
  0xc2   :  { %v66_v13 = vadd.f32 %v65_v12, %v64_v11 }
  0xc4   :  { %v67_v14 = vrot.slane %v66_v13, 1 }
  0xc6   :  { %v68_v15 = vadd.f32 %v67_v14, %v66_v13 }
  0xc8   :  { %90 = vpush %v68_v15 }
  0xf9   :  { %s91_s1 = spop %90 }
  0xfa   :  { %s72_s6 = smul.f32 0.00048828125, %s91_s1 }
  0xfc   :  { %74 = sst [smem:[#allocation8]] %s72_s6 }
  0xfd   :  { %150 = shalt.err (!%p147_p4)
}
  0xfe   :  { %s161_s14 = smov [#allocation8]  }
  0xff   :  { %82 = dma.smem_to_hbm %s161_s14, 16, %s215_s2, [#allocation5]  }
 0x100   :  { %155 = dma.done.wait [#allocation5], 16  }
 0x101   :  { %156 = vsyncadd [#allocation5], 4294967280 }
 0x102   :  { %86 = sfence }
 0x103   :  { %87 = vsyncpa [#allocation4], 1 }
 0x104   :  { %88 = vsyncpa [#allocation7], 1 }
 0x105   :  { %89 = vsyncpa [#allocation5], 1 }

</bundles_post_ra>
